<compile_context>
chip_gen: v6e
topology: v6e:2x2x1
jax: 0.10.0
libtpu: 0.0.40
codegen_flags: <defaults>
</compile_context>

<pallas_src>
import functools

import jax
import jax.numpy as jnp
from jax.experimental import pallas as pl
from jax.experimental.pallas import tpu as pltpu


def _round_up(n, m):
    return ((n + m - 1) // m) * m


def _linear_logsoftmax_kernel(x_ref, w_ref, b_ref, o_ref, *, nclass):
    # Linear: (TB, D) @ (D, Cpad) + (1, Cpad); f32 accumulation on the MXU.
    logits = jnp.dot(x_ref[...], w_ref[...], preferred_element_type=jnp.float32)
    logits = logits + b_ref[...]  # broadcast (1, Cpad) over rows

    # Numerically stable, fused log-softmax over the class axis.
    # Pad columns carry bias = -1e30, so exp() underflows to exactly 0 and
    # neither the max nor the logsumexp is affected by them.
    m = jnp.max(logits, axis=1, keepdims=True)
    lse = m + jnp.log(jnp.sum(jnp.exp(logits - m), axis=1, keepdims=True))
    out = logits - lse

    # Store only the real classes (static slice). The padded columns never
    # reach HBM; the tail-masked store is far cheaper than 8x writeback bytes.
    o_ref[...] = out[:, :nclass].astype(o_ref.dtype)


def prepare_params(w_t, b, *, use_bf16=False):
    """Pad the class axis to a lane-dense multiple of 128 ONCE at setup time.

    Hoisted out of the per-call path so a forward pass does not re-stream the
    whole weight through HBM just to append zero columns.
    w_t: (D, C) transposed nn.Linear weight; b: (C,) bias.
    Returns (w_pad (D, Cpad), b_pad (1, Cpad) f32, C).
    """
    D, C = w_t.shape
    Cpad = max(128, _round_up(C, 128))
    b = b.astype(jnp.float32)
    if Cpad != C:
        # Zero weight columns for pad classes; large-negative bias (NOT -inf,
        # which would give inf-inf = NaN) so pads never affect max / lse.
        w_t = jnp.pad(w_t, ((0, 0), (0, Cpad - C)))
        b = jnp.concatenate([b, jnp.full((Cpad - C,), -1e30, jnp.float32)])
    b_pad = b.reshape(1, Cpad)
    w_pad = w_t.astype(jnp.bfloat16 if use_bf16 else jnp.float32)
    return w_pad, b_pad, C


def _pick_tb(B):
    """Largest batch tile in {512,...,8} keeping batch-pad waste <= ~6%, then
    guarantee >= 2 tiles (when possible) so the 'parallel' grid axis can feed
    both v7x TensorCores. Neutral on single-TC v5e/v6e."""
    b8 = _round_up(max(B, 1), 8)
    tb = 8
    for cand in (512, 256, 128, 64, 32, 16, 8):
        if _round_up(b8, cand) - B <= B // 16:
            tb = cand
            break
    while _round_up(b8, tb) // tb < 2 and tb > 8:
        tb //= 2
    return tb


def linear_logsoftmax(x, w_pad, b_pad, nclass, *, tb=None, use_bf16=False):
    """x: (B, D); (w_pad, b_pad, nclass) from prepare_params()."""
    B, D = x.shape
    Dw, Cpad = w_pad.shape
    assert D == Dw, (D, Dw)
    assert b_pad.shape == (1, Cpad), b_pad.shape
    C = int(nclass)

    if use_bf16:
        x = x.astype(jnp.bfloat16)  # halves x HBM bytes; matmul still accumulates f32

    # --- Batch tiling: bounded pad waste, validated tile size. ---
    if tb is None:
        tb = _pick_tb(B)
    else:
        tb = max(8, _round_up(int(tb), 8))  # f32 sublane requirement
    Bpad = _round_up(B, tb)
    if Bpad != B:
        x = jnp.pad(x, ((0, Bpad - B), (0, 0)))
    grid = (Bpad // tb,)

    # --- Explicit VMEM budget (v5e default scoped limit 16 MiB; v7x 64 MiB
    # physical per TC). Single-buffer the grid-invariant weight/bias when the
    # weight is big enough for the halved footprint to matter. ---
    x_bytes = x.dtype.itemsize
    weight_footprint = D * Cpad * w_pad.dtype.itemsize
    resident_kwargs = (
        {"pipeline_mode": pl.Buffered(1)} if weight_footprint > (2 << 20) else {}
    )
    n_wbuf = 1 if resident_kwargs else 2
    est = (
        2 * tb * D * x_bytes          # x (double-buffered)
        + n_wbuf * weight_footprint   # resident weight
        + n_wbuf * Cpad * 4           # resident bias
        + 2 * tb * C * 4              # output (double-buffered)
        + 4 * tb * Cpad * 4           # in-kernel f32 temporaries (logits etc.)
    )
    vmem_limit = int(min(max(2 * est, 32 << 20), 48 << 20))

    kernel = functools.partial(_linear_logsoftmax_kernel, nclass=C)

    out = pl.pallas_call(
        kernel,
        out_shape=jax.ShapeDtypeStruct((Bpad, C), jnp.float32),
        grid_spec=pltpu.PrefetchScalarGridSpec(
            num_scalar_prefetch=0,
            grid=grid,
            in_specs=[
                # x: walks the batch axis; double-buffered by the pipeline.
                pl.BlockSpec((tb, D), lambda i: (i, 0)),
                # weight + bias: grid-invariant, stay resident in VMEM.
                pl.BlockSpec((D, Cpad), lambda i: (0, 0), **resident_kwargs),
                pl.BlockSpec((1, Cpad), lambda i: (0, 0), **resident_kwargs),
            ],
            # Only the real C classes are written back (block last dim == full
            # array dim): no padded-output HBM traffic, no post-kernel slice.
            out_specs=pl.BlockSpec((tb, C), lambda i: (i, 0)),
        ),
        compiler_params=pltpu.CompilerParams(
            dimension_semantics=("parallel",),  # rows independent -> megacore
            vmem_limit_bytes=vmem_limit,
        ),
    )(x, w_pad, b_pad)

    return out if Bpad == B else out[:B]


def reference(x, w_t, b):
    logits = x @ w_t + b[None, :]
    return jax.nn.log_softmax(logits, axis=1)


if __name__ == "__main__":
    key = jax.random.PRNGKey(0)
    kx, kw, kb, kx2 = jax.random.split(key, 4)

    # LINEAR_LOGSOFTMAX(input_dim=32, nclass=16), batch=8
    B, D, C = 8, 32, 16
    x = jax.random.normal(kx, (B, D), dtype=jnp.float32)
    # Mimic nn.Linear's uniform(-1/sqrt(D), 1/sqrt(D)) init, deterministically.
    bound = 1.0 / (D ** 0.5)
    w = jax.random.uniform(kw, (C, D), minval=-bound, maxval=bound, dtype=jnp.float32)
    b = jax.random.uniform(kb, (C,), minval=-bound, maxval=bound, dtype=jnp.float32)
    w_t = w.T  # (D, C)

    # Pad / reshape parameters once (hoisted out of the per-call path).
    w_pad, b_pad, nclass = prepare_params(w_t, b)

    out = jax.block_until_ready(linear_logsoftmax(x, w_pad, b_pad, nclass))
    ref = reference(x, w_t, b)
    assert out.shape == (B, C)
    assert jnp.allclose(out, ref, atol=1e-5, rtol=1e-5), "mismatch vs reference (small)"

    # Batch not a multiple of the tile -> exercises batch padding, a multi-step
    # grid with resident weights, and a user-supplied tile size.
    B2 = 300
    x2 = jax.random.normal(kx2, (B2, D), dtype=jnp.float32)
    out2 = jax.block_until_ready(linear_logsoftmax(x2, w_pad, b_pad, nclass, tb=128))
    ref2 = reference(x2, w_t, b)
    assert out2.shape == (B2, C)
    assert jnp.allclose(out2, ref2, atol=1e-5, rtol=1e-5), "mismatch vs reference (tiled)"

    # Adaptive tile path (no tb supplied) on the same data.
    out3 = jax.block_until_ready(linear_logsoftmax(x2, w_pad, b_pad, nclass))
    assert jnp.allclose(out3, ref2, atol=1e-5, rtol=1e-5), "mismatch vs reference (auto-tb)"

    print("KERNEL_OK")
</pallas_src>

<mosaic_0001>
module attributes {stable_mosaic.version = 11 : i64} {
  func.func @_linear_logsoftmax_kernel(%arg0: i32, %arg1: memref<8x32xf32, #tpu.memory_space<vmem>>, %arg2: memref<32x128xf32, #tpu.memory_space<vmem>>, %arg3: memref<1x128xf32, #tpu.memory_space<vmem>>, %arg4: memref<8x16xf32, #tpu.memory_space<vmem>>) attributes {dimension_semantics = [#tpu.dimension_semantics<parallel>], iteration_bounds = array<i64: 1>, scalar_prefetch = 0 : i64, scratch_operands = 0 : i64, tpu.core_type = #tpu.core_type<tc>, window_params = [{transform_indices = @transform_0, window_bounds = array<i64: 8, 32>}, {pipeline_mode = #tpu.pipeline_mode<synchronous>, transform_indices = @transform_1, window_bounds = array<i64: 32, 128>}, {pipeline_mode = #tpu.pipeline_mode<synchronous>, transform_indices = @transform_2, window_bounds = array<i64: 1, 128>}, {transform_indices = @transform_3, window_bounds = array<i64: 8, 16>}]} {
    %c0 = arith.constant 0 : index
    %c0_0 = arith.constant 0 : index
    %0 = vector.load %arg1[%c0, %c0_0] : memref<8x32xf32, #tpu.memory_space<vmem>>, vector<8x32xf32>
    %c0_1 = arith.constant 0 : index
    %c0_2 = arith.constant 0 : index
    %1 = vector.load %arg2[%c0_1, %c0_2] : memref<32x128xf32, #tpu.memory_space<vmem>>, vector<32x128xf32>
    %cst = arith.constant dense<0.000000e+00> : vector<8x128xf32>
    %2 = tpu.matmul %0, %1, %cst {dimension_numbers = #tpu.dot_dimension_numbers<[1], [0], [0], [1], [0, 0, 1, 1], [], []>} : vector<8x32xf32>, vector<32x128xf32>, vector<8x128xf32> -> vector<8x128xf32>
    %c0_3 = arith.constant 0 : index
    %c0_4 = arith.constant 0 : index
    %3 = vector.load %arg3[%c0_3, %c0_4] : memref<1x128xf32, #tpu.memory_space<vmem>>, vector<1x128xf32>
    %4 = vector.broadcast %3 : vector<1x128xf32> to vector<8x128xf32>
    %5 = arith.addf %2, %4 : vector<8x128xf32>
    %cst_5 = arith.constant dense<0xFF800000> : vector<8xf32>
    %6 = vector.multi_reduction <maximumf>, %5, %cst_5 [1] : vector<8x128xf32> to vector<8xf32>
    %7 = vector.shape_cast %6 : vector<8xf32> to vector<8x1xf32>
    %8 = vector.broadcast %7 : vector<8x1xf32> to vector<8x128xf32>
    %9 = arith.subf %5, %8 : vector<8x128xf32>
    %10 = math.exp %9 : vector<8x128xf32>
    %cst_6 = arith.constant dense<0.000000e+00> : vector<8xf32>
    %11 = vector.multi_reduction <add>, %10, %cst_6 [1] : vector<8x128xf32> to vector<8xf32>
    %12 = vector.shape_cast %11 : vector<8xf32> to vector<8x1xf32>
    %13 = math.log %12 : vector<8x1xf32>
    %14 = arith.addf %7, %13 : vector<8x1xf32>
    %15 = vector.broadcast %14 : vector<8x1xf32> to vector<8x128xf32>
    %16 = arith.subf %5, %15 : vector<8x128xf32>
    %17 = vector.extract_strided_slice %16 {offsets = [0, 0], sizes = [8, 16], strides = [1, 1]} : vector<8x128xf32> to vector<8x16xf32>
    %c0_7 = arith.constant 0 : index
    %c0_8 = arith.constant 0 : index
    %18 = vector.load %arg4[%c0_7, %c0_8] : memref<8x16xf32, #tpu.memory_space<vmem>>, vector<8x16xf32>
    tpu.vector_store %arg4[%c0_7, %c0_8], %17 {strides = array<i32>} : memref<8x16xf32, #tpu.memory_space<vmem>>, vector<8x16xf32>,
    return
  }
  func.func @transform_0(%arg0: i32) -> (i32, i32) {
    %c0_i32 = arith.constant 0 : i32
    %c0_i32_0 = arith.constant 0 : i32
    return %arg0, %c0_i32 : i32, i32
  }
  func.func @transform_1(%arg0: i32) -> (i32, i32) {
    %c0_i32 = arith.constant 0 : i32
    %c0_i32_0 = arith.constant 0 : i32
    %c0_i32_1 = arith.constant 0 : i32
    return %c0_i32, %c0_i32_0 : i32, i32
  }
  func.func @transform_2(%arg0: i32) -> (i32, i32) {
    %c0_i32 = arith.constant 0 : i32
    %c0_i32_0 = arith.constant 0 : i32
    %c0_i32_1 = arith.constant 0 : i32
    return %c0_i32, %c0_i32_0 : i32, i32
  }
  func.func @transform_3(%arg0: i32) -> (i32, i32) {
    %c0_i32 = arith.constant 0 : i32
    %c0_i32_0 = arith.constant 0 : i32
    return %arg0, %c0_i32 : i32, i32
  }
}

</mosaic_0001>

<bundles_post_ra>
// kernel: tpu_custom_call.1
= control target key start
LH: loop header
LB: loop body
LE: loop exit
PB: predicated region body
PF: predicated region fallthrough
CT: control target
= control target key end

     0   :  { %8 = vsyncpa [#allocation3], 0  ;;  %s290_s0 = inlined_call_operand.hbm [shape: f32[8,32], index: 0, kind: input, shape index: {}]   ;;  %s291_s1 = inlined_call_operand.hbm [shape: f32[32,128], index: 1, kind: input, shape index: {}]   ;;  %s292_s2 = inlined_call_operand.vmem [shape: f32[1,128], index: 2, kind: input, shape index: {}]   ;;  %s293_s3 = inlined_call_operand.hbm [shape: f32[8,16], index: 3, kind: output, shape index: {}]  }
   0x1   :  { %9 = vsyncpa [#allocation6], 0 }
   0x2   :  { %10 = vsyncpa [#allocation4], 0  ;;  %s251_s12 = smov [#allocation2]   ;;  %s252_s14 = smov [#allocation5]  }
   0x3   :  { %s17_s13 = sshll.u32 %s251_s12, 4  ;;  %s26_s15 = sshll.u32 %s252_s14, 4  ;;  %s18_s13 = int_to_ptr.vmem [resolvable:$true] %s17_s13  ;;  %s27_s15 = int_to_ptr.vmem [resolvable:$true] %s26_s15 }
   0x4   :  { %s193_s16 = scalar_lea.vmem %s18_s13, 128  ;;  %p198_p1 = scmp.lt.s32.totalorder %s18_s13, %s18_s13 }
   0x5   :  { %p194_p0 = scmp.ne.s32.totalorder %s18_s13, %s193_s16  ;;  %p199_p2 = scmp.lt.s32.totalorder %s193_s16, %s193_s16 }
   0x7   :  { %p200_p3 = por %p199_p2, %p198_p1 }
   0x9   :  { %p201_p4 = pnand %p200_p3, %p194_p0 }
   0xb   :  { %204 = shalt.err (!%p201_p4)
}
   0xc   :  { %20 = dma.hbm_to_vmem [thread:$0]  %s290_s0, 128, %s18_s13, [#allocation3]  }
   0xd   :  { %s213_s19 = scalar_lea.vmem %s27_s15, 512  ;;  %p218_p6 = scmp.lt.s32.totalorder %s27_s15, %s27_s15 }
   0xe   :  { %p214_p5 = scmp.ne.s32.totalorder %s27_s15, %s213_s19  ;;  %p219_p7 = scmp.lt.s32.totalorder %s213_s19, %s213_s19 }
  0x10   :  { %p220_p8 = por %p219_p7, %p218_p6 }
  0x12   :  { %p221_p9 = pnand %p220_p8, %p214_p5 }
  0x14   :  { %224 = shalt.err (!%p221_p9)
}
  0x15   :  { %s253_s20 = smov 128   ;;  %s254_s21 = smov 8  }
  0x16   :  { %32 = dma.hbm_to_vmem [thread:$0]  %s291_s1, 512, %s27_s15, [#allocation6], %s253_s20, %s253_s20, %s254_s21  }
  0x17   :  { %245 = dma.done.wait [#allocation3], 128  }
  0x18   :  { %246 = vsyncadd [#allocation3], 4294967168 }
  0x19   :  { %247 = dma.done.wait [#allocation6], 512  }
  0x1a   :  { %248 = vsyncadd [#allocation6], 4294966784  ;;  %v255_v0 = vmov 0.0   ;;  %vm256_vm0 = vmmov 0   ;;  %v45_v1 = vld [vmem:[#allocation5 + $0x18] sm:$0xff]  ;;  %v44_v2 = vld [vmem:[#allocation5 + $0x10] sm:$0xff] }
  0x1b   :  { %163 = vmatprep.subr.mxu0 %v255_v0  ;;  %171 = vmatprep.mubr.msk.f32.mxu0 %vm256_vm0, %v255_v0  ;;  %v43_v3 = vld [vmem:[#allocation5 + $0x8] sm:$0xff]  ;;  %v42_v4 = vld [vmem:[#allocation5] sm:$0xff]  ;;  %v41_v5 = vld [vmem:[#allocation2] sm:$0xff]  ;;  %vm53_vm1 = vcmask 261120   ;;  %s257_s24 = smov [#allocation7]   ;;  %vm138_vm2 = vcmask 130048  }
  0x1c   :  { %164 = vmatpush3.msra.mxu0 %v45_v1  ;;  %v156_v6 = vld [vmem:[%s292_s2] ss:$0 sm:$0xff]  ;;  %s146_s25 = sshll.u32 %s257_s24, 4  ;;  %s147_s25 = int_to_ptr.vmem [resolvable:$true] %s146_s25 }
  0x1d   :  { %165 = vmatprep.subr.mxu0 %v255_v0  ;;  %s225_s2 = scalar_lea.vmem %s147_s25, 128  ;;  %p230_p11 = scmp.lt.s32.totalorder %s147_s25, %s147_s25 }
  0x1e   :  { %166 = vmatpush3.msra.mxu0 %v44_v2  ;;  %p226_p10 = scmp.ne.s32.totalorder %s147_s25, %s225_s2  ;;  %p231_p12 = scmp.lt.s32.totalorder %s225_s2, %s225_s2 }
  0x1f   :  { %167 = vmatprep.subr.mxu0 %v255_v0 }
  0x20   :  { %168 = vmatpush3.msra.mxu0 %v43_v3  ;;  %p232_p13 = por %p231_p12, %p230_p11 }
  0x21   :  { %169 = vmatprep.subr.mxu0 %v255_v0 }
  0x22   :  { %170 = vmatpush3.msra.mxu0 %v42_v4  ;;  %p233_p0 = pnand %p232_p13, %p226_p10 }
  0x23   :  { %172 = vmatmul.mubr.msk.f32.vlgmr.msra.gmra.mxu0 %vm53_vm1, %v41_v5 }
  0xe3   :  { %v123_v7 = vpop.f32.mrf.mxu0 }
  0xe4   :  { %v124_v8 = vadd.f32 %v156_v6, %v123_v7 }
  0xe5   :  { %v173_v9 = vpop.f32.mrf.mxu0 }
  0xe6   :  { %127 = vmax.xlane.f32.xlu0 %v124_v8 }
 0x16f   :  { %v128_v10 = vpop.xlane.xlu0 %127 }
 0x170   :  { %v129_v11 = vsub.f32 %v124_v8, %v128_v10 }
 0x172   :  { %v130_v12 = vmul.f32 1.442695, %v129_v11 }
 0x174   :  { %181 = vpow2.f32 %v130_v12 }
 0x181   :  { %v182_v13 = vpop.eup %181 }
 0x182   :  { %132 = vadd.xlane.f32.xlu0 %v182_v13 }
 0x20b   :  { %v133_v14 = vpop.xlane.xlu0 %132 }
 0x20c   :  { %183 = vlog2.f32 %v133_v14 }
 0x219   :  { %v184_v15 = vpop.eup %183 }
 0x21a   :  { %v135_v16 = vmul.f32 0.6931472, %v184_v15 }
 0x21c   :  { %v136_v17 = vadd.f32 %v135_v16, %v128_v10 }
 0x21e   :  { %v137_v18 = vsub.f32 %v124_v8, %v136_v17 }
 0x220   :  { %139 = vst.msk [vmem:[#allocation7] sm:$0xff] %vm138_vm2, %v137_v18 }
 0x221   :  { %236 = shalt.err (!%p233_p0)
}
 0x222   :  { %149 = dma.vmem_to_hbm [thread:$0]  %s147_s25, 128, %s293_s3, [#allocation4]  }
 0x223   :  { %249 = dma.done.wait [#allocation4], 128  }
 0x224   :  { %250 = vsyncadd [#allocation4], 4294967168 }
 0x225   :  { %153 = vsyncpa [#allocation3], 1 }
 0x226   :  { %154 = vsyncpa [#allocation6], 1 }
 0x227   :  { %155 = vsyncpa [#allocation4], 1 }

</bundles_post_ra>
